<compile_context>
chip_gen: v7x
topology: tpu7x:2x2x1
jax: 0.10.0
libtpu: 0.0.40
codegen_flags: <defaults>
</compile_context>

<pallas_src>
import functools

import jax
import jax.numpy as jnp
import numpy as np
from jax.experimental import pallas as pl
from jax.experimental.pallas import tpu as pltpu


# ----------------------------- small helpers -----------------------------


def _round_up(x, m):
    return (x + m - 1) // m * m


_TPU_VMEM_CAP = None


def _vmem_capacity_bytes():
    """Physical VMEM per TensorCore (128 MiB v5e/v6e, 64 MiB v7x)."""
    global _TPU_VMEM_CAP
    if _TPU_VMEM_CAP is None:
        cap = 128 * 1024 * 1024
        try:
            info = pltpu.get_tpu_info()
            cap = int(getattr(info, "vmem_capacity_bytes", cap))
        except Exception:
            pass
        _TPU_VMEM_CAP = cap
    return _TPU_VMEM_CAP


def _vmem_limit_bytes():
    """Generation-aware scoped-VMEM request (leave compiler headroom)."""
    cap = _vmem_capacity_bytes()
    if cap <= 64 * 1024 * 1024:          # v7x: 64 MiB physical per TC
        return 40 * 1024 * 1024
    return 64 * 1024 * 1024              # v5e / v6e: 128 MiB physical


def _default_row_tile(dtype):
    """Default row-tile for the hot MLP kernel.

    Bigger tiles amortize the ~0.35 us per-grid-step overhead; cap lower on
    v7x (half the VMEM) for f32, full 2048 for bf16 / v5e / v6e.
    """
    cap = _vmem_capacity_bytes()
    itemsize = jnp.dtype(dtype).itemsize
    if cap <= 64 * 1024 * 1024 and itemsize >= 4:
        return 1024
    return 2048


def _choose_row_tile(num_rows, max_tile):
    """Row tile (multiple of 16, <= max_tile); caller pads rows up to it."""
    max_tile = max(16, (max_tile // 16) * 16)
    if num_rows <= max_tile:
        return _round_up(num_rows, 16)
    return max_tile


# ----------------------------- Pallas kernels -----------------------------


def _linear_kernel(x_ref, w_ref, b_ref, o_ref, *, relu):
    w = w_ref[...]
    y = jnp.dot(x_ref[...].astype(w.dtype), w,
                preferred_element_type=jnp.float32)
    y = y + b_ref[...]                      # f32 bias add
    if relu:
        y = jnp.maximum(y, 0.0)
    o_ref[...] = y.astype(o_ref.dtype)


def pallas_linear(x, w, b, *, relu=False, out_dtype=None, block_rows=1024):
    """y = (relu)(x @ w + b).  x: (P, K), w: (K, Cout), b: (1, Cout) f32.

    Row-tiled over P so large patch matrices (big cond images) never blow
    VMEM and the pipeline overlaps DMA with compute.  Runs once per cond
    image (not in the denoising hot path).
    """
    P, K = x.shape
    Cout = w.shape[1]
    out_dtype = out_dtype or x.dtype

    tp = _choose_row_tile(P, block_rows)
    p_pad = _round_up(P, tp)
    if p_pad != P:
        x = jnp.pad(x, ((0, p_pad - P), (0, 0)))

    y = pl.pallas_call(
        functools.partial(_linear_kernel, relu=relu),
        out_shape=jax.ShapeDtypeStruct((p_pad, Cout), out_dtype),
        grid=(p_pad // tp,),
        in_specs=[
            pl.BlockSpec((tp, K), lambda i: (i, 0)),
            pl.BlockSpec((K, Cout), lambda i: (0, 0)),   # grid-invariant
            pl.BlockSpec((1, Cout), lambda i: (0, 0)),   # grid-invariant
        ],
        out_specs=pl.BlockSpec((tp, Cout), lambda i: (i, 0)),
        compiler_params=pltpu.CompilerParams(
            dimension_semantics=("parallel",),
            vmem_limit_bytes=_vmem_limit_bytes()),
    )(x, w, b)
    return y[:P] if p_pad != P else y


def _lllite_mlp_kernel(x_ref, bmx_ref, wd_ref, bd_ref, wmd_ref, wu_ref, bu_ref,
                       o_ref):
    x = x_ref[...]                          # (TR, Din), already compute dtype

    # down = ReLU(x @ Wd + bd)              (f32 accumulation / epilogue)
    d = jnp.dot(x, wd_ref[...], preferred_element_type=jnp.float32)
    d = jnp.maximum(d + bd_ref[...], 0.0)

    # mid = ReLU(d @ Wmd + bm_eff)          (cx @ Wm[:Dc] + bm precomputed)
    wmd = wmd_ref[...]
    m = jnp.dot(d.astype(wmd.dtype), wmd, preferred_element_type=jnp.float32)
    m = jnp.maximum(m + bmx_ref[...].astype(jnp.float32), 0.0)

    # up = m @ Wu_eff + bu_eff              (multiplier already folded in)
    wu = wu_ref[...]
    u = jnp.dot(m.astype(wu.dtype), wu, preferred_element_type=jnp.float32)
    o_ref[...] = (u + bu_ref[...]).astype(o_ref.dtype)


def lllite_mlp(x, bm_eff, wd, bd, wmd, wu, bu, *, max_token_tile=None):
    """Fused down/mid/up hot path.

    x: (N, S, Din); bm_eff: (N, S, M) in the compute dtype.
    (N, S) is flattened to one long row axis, padded to a multiple of the row
    tile, and gridded on a single "parallel" axis (even 2-TC sharding on
    v7x).  Weights/biases use grid-invariant index maps (VMEM resident).
    """
    N, S, Din = x.shape
    M = wd.shape[1]
    R = N * S
    xf = x.reshape(R, Din)
    bmf = bm_eff.reshape(R, M)

    if max_token_tile is None:
        max_token_tile = _default_row_tile(x.dtype)
    tr = _choose_row_tile(R, max_token_tile)
    r_pad = _round_up(R, tr)
    if r_pad != R:
        xf = jnp.pad(xf, ((0, r_pad - R), (0, 0)))
        bmf = jnp.pad(bmf, ((0, r_pad - R), (0, 0)))

    y = pl.pallas_call(
        _lllite_mlp_kernel,
        out_shape=jax.ShapeDtypeStruct((r_pad, Din), x.dtype),
        grid=(r_pad // tr,),
        in_specs=[
            pl.BlockSpec((tr, Din), lambda i: (i, 0)),   # x rows
            pl.BlockSpec((tr, M), lambda i: (i, 0)),     # bm_eff rows
            pl.BlockSpec((Din, M), lambda i: (0, 0)),    # Wd     (invariant)
            pl.BlockSpec((1, M), lambda i: (0, 0)),      # bd     (invariant)
            pl.BlockSpec((M, M), lambda i: (0, 0)),      # Wm[Dc:](invariant)
            pl.BlockSpec((M, Din), lambda i: (0, 0)),    # Wu*mult(invariant)
            pl.BlockSpec((1, Din), lambda i: (0, 0)),    # bu*mult(invariant)
        ],
        out_specs=pl.BlockSpec((tr, Din), lambda i: (i, 0)),
        compiler_params=pltpu.CompilerParams(
            dimension_semantics=("parallel",),
            vmem_limit_bytes=_vmem_limit_bytes()),
    )(xf, bmf, wd, bd, wmd, wu, bu)

    if r_pad != R:
        y = y[:R]
    return y.reshape(N, S, Din)


@functools.partial(jax.jit, static_argnames=("max_token_tile",))
def _hot_path(x, bm_eff, wd, bd, wmd, wu, bu, *, max_token_tile):
    """Per-denoising-step hot path, jitted once (batch-broadcast + MLP)."""
    if bm_eff.shape[0] != x.shape[0]:
        bm_eff = jnp.tile(bm_eff, (x.shape[0] // bm_eff.shape[0], 1, 1))
    return lllite_mlp(x, bm_eff, wd, bd, wmd, wu, bu,
                      max_token_tile=max_token_tile)


# ---------- conv (stride == kernel, padding=0) via Pallas matmul ----------


def conv_stride_eq(x_nchw, w_oihw, b_row, k, *, relu):
    """nn.Conv2d(kernel_size=k, stride=k, padding=0) as patch-matmul (exact)."""
    N, C, H, W = x_nchw.shape
    OH, OW = H // k, W // k
    patches = (x_nchw.reshape(N, C, OH, k, OW, k)
               .transpose(0, 2, 4, 1, 3, 5)
               .reshape(N * OH * OW, C * k * k))
    wf = w_oihw.reshape(w_oihw.shape[0], -1).T          # (C*k*k, Cout)
    y = pallas_linear(patches, wf, b_row, relu=relu, out_dtype=x_nchw.dtype)
    return y.reshape(N, OH, OW, -1).transpose(0, 3, 1, 2)  # back to NCHW


# ----------------------------- module wrapper -----------------------------


class LLLiteModuleJax:
    """Non-conv2d (attention) variant of LLLiteModule, depth == 1."""
    # TODO(synk): is_conv2d=True (1x1-conv) variant is not implemented.

    def __init__(self, in_dim, cond_emb_dim, mlp_dim, multiplier,
                 num_steps=0, start_step=0, end_step=0, key=None,
                 param_dtype=jnp.float32, max_token_tile=None):
        self.multiplier = multiplier
        self.num_steps = num_steps
        self.start_step = start_step
        self.end_step = end_step
        self.current_step = 0
        self.cond_image = None
        self.cond_emb_dim = cond_emb_dim
        self.max_token_tile = max_token_tile
        self.compute_dtype = jnp.dtype(param_dtype)
        self._bm_eff = None

        _vmem_capacity_bytes()   # query/ cache TPU info eagerly (outside jit)

        ks = jax.random.split(key, 10)
        f32 = jnp.float32
        ce2 = cond_emb_dim // 2
        s = 0.1
        # f32 master parameters (also used by the pure-JAX reference).
        self.params_f32 = dict(
            # conditioning1: Conv2d(3, ce/2, 4, 4) -> ReLU -> Conv2d(ce/2, ce, 2, 2)
            c1_w=(s * jax.random.normal(ks[0], (ce2, 3, 4, 4))).astype(f32),
            c1_b=(s * jax.random.normal(ks[1], (ce2,))).astype(f32),
            c2_w=(s * jax.random.normal(ks[2], (cond_emb_dim, ce2, 2, 2))).astype(f32),
            c2_b=(s * jax.random.normal(ks[3], (cond_emb_dim,))).astype(f32),
            # down / mid / up linears, stored as (in, out) = W.T of torch Linear
            wd=(s * jax.random.normal(ks[4], (in_dim, mlp_dim))).astype(f32),
            bd=(s * jax.random.normal(ks[5], (1, mlp_dim))).astype(f32),
            wm=(s * jax.random.normal(ks[6], (cond_emb_dim + mlp_dim, mlp_dim))).astype(f32),
            bm=(s * jax.random.normal(ks[7], (1, mlp_dim))).astype(f32),
            wu=(s * jax.random.normal(ks[8], (mlp_dim, in_dim))).astype(f32),
            bu=(s * jax.random.normal(ks[9], (1, in_dim))).astype(f32),
        )
        p = self.params_f32
        Dc = cond_emb_dim
        # Kernel-ready parameters: weights in param_dtype (bf16 halves HBM/VMEM
        # traffic and doubles MXU throughput), biases kept in f32 (added to the
        # f32 accumulator), multiplier folded into the 'up' weights/bias, and
        # Wm split so the cond half can be precomputed into bm_eff.
        self.kparams = dict(
            c1_w=p["c1_w"].astype(param_dtype),
            c1_b=p["c1_b"].reshape(1, -1),
            c2_w=p["c2_w"].astype(param_dtype),
            c2_b=p["c2_b"].reshape(1, -1),
            wd=p["wd"].astype(param_dtype),
            bd=p["bd"],
            wmc=p["wm"][:Dc, :].astype(param_dtype),
            wmd=p["wm"][Dc:, :].astype(param_dtype),
            bm=p["bm"],
            wu=(p["wu"] * float(multiplier)).astype(param_dtype),
            bu=(p["bu"] * float(multiplier)),
        )

    def set_cond_image(self, cond_image):
        self.cond_image = cond_image
        self._bm_eff = None
        self.current_step = 0

    def _conditioning(self, cond_image, dtype):
        kp = self.kparams
        cx = conv_stride_eq(cond_image.astype(dtype), kp["c1_w"], kp["c1_b"], 4,
                            relu=True)
        cx = conv_stride_eq(cx, kp["c2_w"], kp["c2_b"], 2, relu=False)
        n, c, h, w = cx.shape
        return cx.reshape(n, c, h * w).transpose(0, 2, 1)   # (n, h*w, c)

    def forward(self, x):
        # step gating (plain python state, same as the torch module)
        if self.num_steps > 0:
            if self.current_step < self.start_step:
                self.current_step += 1
                return jnp.zeros_like(x)
            elif self.current_step >= self.end_step:
                self.current_step += 1
                if self.current_step >= self.num_steps:
                    self.current_step = 0
                return jnp.zeros_like(x)
            else:
                self.current_step += 1
                if self.current_step >= self.num_steps:
                    self.current_step = 0

        kp = self.kparams
        cdt = self.compute_dtype
        # Cast x in the wrapper (once), never inside the kernel, so bf16 mode
        # streams bf16 x/out through HBM (this kernel is HBM-bound).
        x = x.astype(cdt)
        N, S, _ = x.shape

        if self._bm_eff is None:
            # Precompute bm_eff = cond_emb @ Wm[:Dc] + bm once per cond image;
            # constant across denoising steps, stored in the compute dtype so
            # the hot kernel streams half the bytes in bf16 mode.
            cx = self._conditioning(self.cond_image, cdt)   # (Nc, Sc, Dc)
            nc, sc, dc = cx.shape
            bm_eff = pallas_linear(cx.reshape(nc * sc, dc), kp["wmc"], kp["bm"],
                                   relu=False, out_dtype=cdt)
            self._bm_eff = bm_eff.reshape(nc, sc, -1)

        bm_eff = self._bm_eff
        # TODO(synk): F.interpolate fallback for token-count mismatch is not
        # implemented; shapes must match as in the normal ControlLLLite path.
        assert bm_eff.shape[1] == S, "cond token count must match x tokens"
        assert N % bm_eff.shape[0] == 0, "batch must be a multiple of cond batch"

        return _hot_path(x, bm_eff, kp["wd"], kp["bd"], kp["wmd"],
                         kp["wu"], kp["bu"],
                         max_token_tile=self.max_token_tile)


# ----------------------------- pure-JAX reference -----------------------------


def _ref_conv(x, w, b, stride):
    y = jax.lax.conv_general_dilated(x, w, (stride, stride), "VALID",
                                     dimension_numbers=("NCHW", "OIHW", "NCHW"))
    return y + b.reshape(1, -1, 1, 1)


def ref_forward(mod, x, cond_image):
    p = mod.params_f32
    x = x.astype(jnp.float32)
    cond_image = cond_image.astype(jnp.float32)
    cx = jnp.maximum(_ref_conv(cond_image, p["c1_w"], p["c1_b"], 4), 0.0)
    cx = _ref_conv(cx, p["c2_w"], p["c2_b"], 2)
    n, c, h, w = cx.shape
    cx = cx.reshape(n, c, h * w).transpose(0, 2, 1)
    if x.shape[0] != cx.shape[0]:
        cx = jnp.tile(cx, (x.shape[0] // cx.shape[0], 1, 1))
    d = jnp.maximum(x @ p["wd"] + p["bd"], 0.0)
    cat = jnp.concatenate([cx, d], axis=2)
    m = jnp.maximum(cat @ p["wm"] + p["bm"], 0.0)
    u = m @ p["wu"] + p["bu"]
    return u * mod.multiplier


# ----------------------------- demo -----------------------------

if __name__ == "__main__":
    key = jax.random.PRNGKey(0)
    k_param, k_x, k_cond, k_x2, k_cond2 = jax.random.split(key, 5)

    # ---- test 1: small shapes, f32, single row tile, strict check ----
    N, S, IN_DIM = 2, 16, 32           # S = (32/8)^2 from the cond downsampling
    COND_EMB_DIM, MLP_DIM, MULT = 32, 16, 2

    mod = LLLiteModuleJax(in_dim=IN_DIM, cond_emb_dim=COND_EMB_DIM,
                          mlp_dim=MLP_DIM, multiplier=MULT,
                          num_steps=0, key=k_param)
    x = jax.random.normal(k_x, (N, S, IN_DIM), dtype=jnp.float32)
    cond_image = jax.random.uniform(k_cond, (1, 3, 32, 32), dtype=jnp.float32)
    mod.set_cond_image(cond_image)
    out = jax.block_until_ready(mod.forward(x))
    ref = jax.block_until_ready(ref_forward(mod, x, cond_image))
    np.testing.assert_allclose(np.asarray(out), np.asarray(ref),
                               rtol=1e-5, atol=1e-5)

    # ---- test 2: flattened row grid with padding (R=2048, tile=384), f32 ----
    N2, IN2, CE2, M2 = 2, 128, 32, 128
    S2 = (256 // 8) ** 2               # 1024 tokens -> R = 2048 rows
    mod2 = LLLiteModuleJax(in_dim=IN2, cond_emb_dim=CE2, mlp_dim=M2,
                           multiplier=MULT, num_steps=0, key=k_param,
                           max_token_tile=384)   # 2048 % 384 != 0 -> pad path
    x2 = jax.random.normal(k_x2, (N2, S2, IN2), dtype=jnp.float32)
    cond_image2 = jax.random.uniform(k_cond2, (1, 3, 256, 256), dtype=jnp.float32)
    mod2.set_cond_image(cond_image2)
    out2 = jax.block_until_ready(mod2.forward(x2))
    ref2 = jax.block_until_ready(ref_forward(mod2, x2, cond_image2))
    np.testing.assert_allclose(np.asarray(out2), np.asarray(ref2),
                               rtol=5e-4, atol=5e-4)

    # ---- test 3: bf16 params / IO end-to-end (loose tolerance) ----
    mod3 = LLLiteModuleJax(in_dim=IN2, cond_emb_dim=CE2, mlp_dim=M2,
                           multiplier=MULT, num_steps=0, key=k_param,
                           param_dtype=jnp.bfloat16, max_token_tile=256)
    mod3.set_cond_image(cond_image2)
    out3 = jax.block_until_ready(mod3.forward(x2))   # wrapper casts x to bf16
    assert out3.dtype == jnp.bfloat16
    np.testing.assert_allclose(np.asarray(out3.astype(jnp.float32)),
                               np.asarray(ref2), rtol=1e-1, atol=1e-1)

    print("KERNEL_OK")
</pallas_src>

<mosaic_0001>
module attributes {stable_mosaic.version = 11 : i64} {
  func.func @_linear_kernel(%arg0: i32, %arg1: memref<64x48xf32, #tpu.memory_space<vmem>>, %arg2: memref<48x16xf32, #tpu.memory_space<vmem>>, %arg3: memref<1x16xf32, #tpu.memory_space<vmem>>, %arg4: memref<64x16xf32, #tpu.memory_space<vmem>>) attributes {dimension_semantics = [#tpu.dimension_semantics<parallel>], iteration_bounds = array<i64: 1>, scalar_prefetch = 0 : i64, scratch_operands = 0 : i64, tpu.core_type = #tpu.core_type<tc>, window_params = [{transform_indices = @transform_0, window_bounds = array<i64: 64, 48>}, {pipeline_mode = #tpu.pipeline_mode<synchronous>, transform_indices = @transform_1, window_bounds = array<i64: 48, 16>}, {pipeline_mode = #tpu.pipeline_mode<synchronous>, transform_indices = @transform_2, window_bounds = array<i64: 1, 16>}, {transform_indices = @transform_3, window_bounds = array<i64: 64, 16>}]} {
    %c0 = arith.constant 0 : index
    %c0_0 = arith.constant 0 : index
    %0 = vector.load %arg2[%c0, %c0_0] : memref<48x16xf32, #tpu.memory_space<vmem>>, vector<48x16xf32>
    %c0_1 = arith.constant 0 : index
    %c0_2 = arith.constant 0 : index
    %1 = vector.load %arg1[%c0_1, %c0_2] : memref<64x48xf32, #tpu.memory_space<vmem>>, vector<64x48xf32>
    %cst = arith.constant dense<0.000000e+00> : vector<64x16xf32>
    %2 = tpu.matmul %1, %0, %cst {dimension_numbers = #tpu.dot_dimension_numbers<[1], [0], [0], [1], [0, 0, 1, 1], [], []>} : vector<64x48xf32>, vector<48x16xf32>, vector<64x16xf32> -> vector<64x16xf32>
    %c0_3 = arith.constant 0 : index
    %c0_4 = arith.constant 0 : index
    %3 = vector.load %arg3[%c0_3, %c0_4] : memref<1x16xf32, #tpu.memory_space<vmem>>, vector<1x16xf32>
    %4 = vector.broadcast %3 : vector<1x16xf32> to vector<64x16xf32>
    %5 = arith.addf %2, %4 : vector<64x16xf32>
    %cst_5 = arith.constant 0.000000e+00 : f32
    %6 = vector.broadcast %cst_5 : f32 to vector<64x16xf32>
    %7 = arith.maximumf %5, %6 : vector<64x16xf32>
    %c0_6 = arith.constant 0 : index
    %c0_7 = arith.constant 0 : index
    %8 = vector.load %arg4[%c0_6, %c0_7] : memref<64x16xf32, #tpu.memory_space<vmem>>, vector<64x16xf32>
    tpu.vector_store %arg4[%c0_6, %c0_7], %7 {strides = array<i32>} : memref<64x16xf32, #tpu.memory_space<vmem>>, vector<64x16xf32>,
    return
  }
  func.func @transform_0(%arg0: i32) -> (i32, i32) {
    %c0_i32 = arith.constant 0 : i32
    %c0_i32_0 = arith.constant 0 : i32
    return %arg0, %c0_i32 : i32, i32
  }
  func.func @transform_1(%arg0: i32) -> (i32, i32) {
    %c0_i32 = arith.constant 0 : i32
    %c0_i32_0 = arith.constant 0 : i32
    %c0_i32_1 = arith.constant 0 : i32
    return %c0_i32, %c0_i32_0 : i32, i32
  }
  func.func @transform_2(%arg0: i32) -> (i32, i32) {
    %c0_i32 = arith.constant 0 : i32
    %c0_i32_0 = arith.constant 0 : i32
    %c0_i32_1 = arith.constant 0 : i32
    return %c0_i32, %c0_i32_0 : i32, i32
  }
  func.func @transform_3(%arg0: i32) -> (i32, i32) {
    %c0_i32 = arith.constant 0 : i32
    %c0_i32_0 = arith.constant 0 : i32
    return %arg0, %c0_i32 : i32, i32
  }
}

</mosaic_0001>

<bundles_post_ra>
// kernel: tpu_custom_call.1
= control target key start
LH: loop header
LB: loop body
LE: loop exit
PB: predicated region body
PF: predicated region fallthrough
CT: control target
= control target key end

     0   :  { %8 = vsyncpa [#allocation3], 0  ;;  %s511_s0 = inlined_call_operand.hbm [shape: f32[64,48], index: 0, kind: input, shape index: {}]   ;;  %s512_s1 = inlined_call_operand.hbm [shape: f32[48,16], index: 1, kind: input, shape index: {}]   ;;  %s513_s2 = inlined_call_operand.hbm [shape: f32[1,16], index: 2, kind: input, shape index: {}]   ;;  %s514_s3 = inlined_call_operand.hbm [shape: f32[64,16], index: 3, kind: output, shape index: {}]  }
   0x1   :  { %9 = vsyncpa [#allocation6], 0 }
   0x2   :  { %10 = vsyncpa [#allocation4], 0  ;;  %s405_s12 = smov [#allocation5]   ;;  %s406_s14 = smov [#allocation2]  }
   0x3   :  { %s28_s13 = sshll.u32 %s405_s12, 4  ;;  %s16_s15 = sshll.u32 %s406_s14, 4  ;;  %s29_s13 = int_to_ptr.vmem [resolvable:$true] %s28_s13  ;;  %s431_s15 = int_to_ptr.vmem [resolvable:$true] %s16_s15 }
   0x4   :  { %s311_s18 = scalar_lea.hbm %s512_s1, 768 }
   0x5   :  { %p312_p0 = scmp.ne.s32.totalorder %s512_s1, %s311_s18  ;;  %p315_p1 = scmp.lt.u32.totalorder %s311_s18, %s512_s1 }
   0x7   :  { %p317_p2 = pnand %p315_p1, %p312_p0 }
   0x9   :  { %320 = shalt.err (!%p317_p2)
}
   0xa   :  { %s321_s23 = scalar_lea.vmem %s29_s13, 768  ;;  %p326_p4 = scmp.lt.s32.totalorder %s29_s13, %s29_s13 }
   0xb   :  { %p322_p3 = scmp.ne.s32.totalorder %s29_s13, %s321_s23  ;;  %p327_p5 = scmp.lt.s32.totalorder %s321_s23, %s321_s23 }
   0xd   :  { %p328_p6 = por %p327_p5, %p326_p4 }
   0xf   :  { %p329_p7 = pnand %p328_p6, %p322_p3 }
  0x11   :  { %332 = shalt.err (!%p329_p7)
}
  0x12   :  { %s407_s24 = smov 128   ;;  %s408_s25 = smov 8  }
  0x13   :  { %34 = dma.hbm_to_vmem [thread:$0]  %s512_s1, 768, %s29_s13, [#allocation6], %s407_s24, %s407_s24, %s408_s25  }
  0x14   :  { %s333_s30 = scalar_lea.hbm %s511_s0, 1024 }
  0x15   :  { %p334_p8 = scmp.ne.s32.totalorder %s511_s0, %s333_s30  ;;  %p337_p9 = scmp.lt.u32.totalorder %s333_s30, %s511_s0 }
  0x17   :  { %p339_p10 = pnand %p337_p9, %p334_p8 }
  0x19   :  { %342 = shalt.err (!%p339_p10)
}
  0x1a   :  { %s343_s8 = scalar_lea.vmem %s431_s15, 1024  ;;  %p348_p12 = scmp.lt.s32.totalorder %s431_s15, %s431_s15 }
  0x1b   :  { %p344_p11 = scmp.ne.s32.totalorder %s431_s15, %s343_s8  ;;  %p349_p13 = scmp.lt.s32.totalorder %s343_s8, %s343_s8 }
  0x1d   :  { %p350_p0 = por %p349_p13, %p348_p12 }
  0x1f   :  { %p351_p1 = pnand %p350_p0, %p344_p11 }
  0x21   :  { %354 = shalt.err (!%p351_p1)
}
  0x22   :  { %22 = dma.hbm_to_vmem [thread:$0]  %s511_s0, 1024, %s431_s15, [#allocation3], %s407_s24, %s407_s24, %s408_s25  }
  0x23   :  { %s409_s10 = smov [#allocation7]   ;;  %s355_s14 = scalar_lea.hbm %s513_s2, 16 }
  0x24   :  { %s41_s11 = sshll.u32 %s409_s10, 4  ;;  %p356_p2 = scmp.ne.s32.totalorder %s513_s2, %s355_s14  ;;  %s42_s11 = int_to_ptr.vmem [resolvable:$true] %s41_s11 }
  0x25   :  { %p359_p3 = scmp.lt.u32.totalorder %s355_s14, %s513_s2 }
  0x27   :  { %p361_p4 = pnand %p359_p3, %p356_p2 }
  0x29   :  { %364 = shalt.err (!%p361_p4)
}
  0x2a   :  { %s365_s20 = scalar_lea.vmem %s42_s11, 16  ;;  %s369_s0 = scalar_lea.vmem %s42_s11, 32 }
  0x2b   :  { %p366_p5 = scmp.ne.s32.totalorder %s42_s11, %s365_s20  ;;  %p370_p6 = scmp.lt.s32.totalorder %s42_s11, %s42_s11 }
  0x2c   :  { %p371_p7 = scmp.lt.s32.totalorder %s369_s0, %s365_s20 }
  0x2e   :  { %p372_p8 = por %p371_p7, %p370_p6 }
  0x30   :  { %p373_p9 = pnand %p372_p8, %p366_p5 }
  0x32   :  { %376 = shalt.err (!%p373_p9)
}
  0x33   :  { %44 = dma.hbm_to_vmem [thread:$0]  %s513_s2, 16, %s42_s11, [#allocation6]  }
  0x34   :  { %399 = dma.done.wait [#allocation3], 1024  }
  0x35   :  { %400 = vsyncadd [#allocation3], 4294966272 }
  0x36   :  { %401 = dma.done.wait [#allocation6], 784  }
  0x37   :  { %402 = vsyncadd [#allocation6], 4294966512  ;;  %v54_v0 = vld [vmem:[#allocation5] sm:$0xff]  ;;  %v55_v1 = vld [vmem:[#allocation5 + $0x8] sm:$0xff]  ;;  %vm75_vm0 = vcmask 392192   ;;  %vm213_vm1 = vcmask 130048  }
  0x38   :  { %v56_v2 = vld [vmem:[#allocation5 + $0x10] sm:$0xff]  ;;  %v287_v3 = vpack.c.bf16 %v55_v1, %v54_v0  ;;  %v57_v4 = vld [vmem:[#allocation5 + $0x18] sm:$0xff]  ;;  %v58_v6 = vld [vmem:[#allocation5 + $0x20] sm:$0xff]  ;;  %s410_s2 = smov [#allocation8]  }
  0x39   :  { %v291_v5 = vpack.c.bf16 %v57_v4, %v56_v2  ;;  %v59_v7 = vld [vmem:[#allocation5 + $0x28] sm:$0xff]  ;;  %v60_v8 = vld [vmem:[#allocation2] sm:$0xff]  ;;  %v62_v13 = vld [vmem:[#allocation2 + $0x10] sm:$0xff]  ;;  %s227_s22 = sshll.u32 %s410_s2, 4  ;;  %s228_s22 = int_to_ptr.vmem [resolvable:$true] %s227_s22 }
  0x3a   :  { %288 = vmatprep.subr.bf16.mxu0 %v287_v3  ;;  %299 = vmatprep.subr.bf16.mxu1 %v287_v3  ;;  %v64_v9 = vld [vmem:[#allocation2 + $0x20] sm:$0xff]  ;;  %v295_v10 = vpack.c.bf16 %v59_v7, %v58_v6  ;;  %v61_v11 = vld [vmem:[#allocation2 + $0x8] sm:$0xff]  ;;  %v66_v14 = vld [vmem:[#allocation2 + $0x30] sm:$0xff]  ;;  %s377_s23 = scalar_lea.vmem %s228_s22, 1024  ;;  %p382_p11 = scmp.lt.s32.totalorder %s228_s22, %s228_s22 }
  0x3b   :  { %290 = vmatpush3.bf16.msra.mxu0 %v287_v3  ;;  %302 = vmatpush3.bf16.msra.mxu1 %v287_v3  ;;  %v65_v12 = vld [vmem:[#allocation2 + $0x28] sm:$0xff]  ;;  %v63_v15 = vld [vmem:[#allocation2 + $0x18] sm:$0xff]  ;;  %v240_v17 = vld [vmem:[#allocation7] ss:$0 sm:$0xff]  ;;  %p378_p10 = scmp.ne.s32.totalorder %s228_s22, %s377_s23  ;;  %p383_p12 = scmp.lt.s32.totalorder %s377_s23, %s377_s23 }
  0x3c   :  { %292 = vmatprep.subr.bf16.mxu0 %v291_v5  ;;  %300 = vmatprep.subr.bf16.mxu1 %v291_v5  ;;  %v67_v16 = vld [vmem:[#allocation2 + $0x38] sm:$0xff] }
  0x3d   :  { %275 = vmatprep.mubr.msk.f32.mxu0 %vm75_vm0, %v60_v8  ;;  %281 = vmatprep.mubr.msk.f32.mxu1 %vm75_vm0, %v64_v9  ;;  %p384_p13 = por %p383_p12, %p382_p11 }
  0x3f   :  { %294 = vmatpush3.bf16.msra.mxu0 %v291_v5  ;;  %303 = vmatpush3.bf16.msra.mxu1 %v291_v5  ;;  %p385_p0 = pnand %p384_p13, %p378_p10 }
  0x40   :  { %296 = vmatprep.subr.bf16.mxu0 %v295_v10  ;;  %301 = vmatprep.subr.bf16.mxu1 %v295_v10 }
  0x43   :  { %298 = vmatpush3.bf16.msra.mxu0 %v295_v10  ;;  %304 = vmatpush3.bf16.msra.mxu1 %v295_v10 }
  0x46   :  { %276 = vmatmul.mubr.msk.f32.vlgmr.msra.gmra.mrb[0].mxu0 %vm75_vm0, %v61_v11  ;;  %282 = vmatmul.mubr.msk.f32.vlgmr.msra.gmra.mrb[0].mxu1 %vm75_vm0, %v65_v12 }
  0x47   :  { %278 = vmatprep.mubr.msk.f32.mxu0 %vm75_vm0, %v62_v13  ;;  %284 = vmatprep.mubr.msk.f32.mxu1 %vm75_vm0, %v66_v14 }
  0x4a   :  { %279 = vmatmul.mubr.msk.f32.gmra.mrb[2].mxu0 %vm75_vm0, %v63_v15  ;;  %285 = vmatmul.mubr.msk.f32.gmra.mrb[2].mxu1 %vm75_vm0, %v67_v16 }
 0x119   :  { %v277_v18 = vpop.f32.mrb[0].mxu0  ;;  %v283_v19 = vpop.f32.mrb[0].mxu1 }
 0x11a   :  { %v172_v20 = vadd.f32 %v277_v18, %v240_v17  ;;  %v192_v21 = vadd.f32 %v283_v19, %v240_v17  ;;  %v166_v22 = vpop.f32.mrb[1].mxu0  ;;  %v186_v23 = vpop.f32.mrb[1].mxu1 }
 0x11b   :  { %v167_v24 = vadd.f32 %v240_v17, %v166_v22  ;;  %v187_v25 = vadd.f32 %v240_v17, %v186_v23 }
 0x11c   :  { %v206_v26 = vmax.f32 %v172_v20, 0.0  ;;  %v210_v27 = vmax.f32 %v192_v21, 0.0 }
 0x11d   :  { %v205_v28 = vmax.f32 %v167_v24, 0.0  ;;  %v209_v29 = vmax.f32 %v187_v25, 0.0  ;;  %v280_v30 = vpop.f32.mrb[2].mxu0  ;;  %v286_v31 = vpop.f32.mrb[2].mxu1 }
 0x11e   :  { %215 = vst.msk [vmem:[#allocation8 + $0x8] sm:$0xff] %vm213_vm1, %v206_v26  ;;  %219 = vst.msk [vmem:[#allocation8 + $0x28] sm:$0xff] %vm213_vm1, %v210_v27  ;;  %v182_v32 = vadd.f32 %v280_v30, %v240_v17  ;;  %v202_v33 = vadd.f32 %v286_v31, %v240_v17  ;;  %v176_v34 = vpop.f32.mrb[3].mxu0  ;;  %v196_v35 = vpop.f32.mrb[3].mxu1 }
 0x11f   :  { %214 = vst.msk [vmem:[#allocation8] sm:$0xff] %vm213_vm1, %v205_v28  ;;  %218 = vst.msk [vmem:[#allocation8 + $0x20] sm:$0xff] %vm213_vm1, %v209_v29  ;;  %v177_v36 = vadd.f32 %v240_v17, %v176_v34  ;;  %v197_v37 = vadd.f32 %v240_v17, %v196_v35 }
 0x120   :  { %v208_v38 = vmax.f32 %v182_v32, 0.0  ;;  %v212_v39 = vmax.f32 %v202_v33, 0.0 }
 0x121   :  { %v207_v40 = vmax.f32 %v177_v36, 0.0  ;;  %v211_v41 = vmax.f32 %v197_v37, 0.0 }
 0x122   :  { %217 = vst.msk [vmem:[#allocation8 + $0x18] sm:$0xff] %vm213_vm1, %v208_v38  ;;  %221 = vst.msk [vmem:[#allocation8 + $0x38] sm:$0xff] %vm213_vm1, %v212_v39 }
 0x123   :  { %216 = vst.msk [vmem:[#allocation8 + $0x10] sm:$0xff] %vm213_vm1, %v207_v40  ;;  %220 = vst.msk [vmem:[#allocation8 + $0x30] sm:$0xff] %vm213_vm1, %v211_v41 }
 0x124   :  { %388 = shalt.err (!%p385_p0)
}
 0x125   :  { %s389_s28 = scalar_lea.hbm %s514_s3, 1024 }
 0x126   :  { %p390_p1 = scmp.ne.s32.totalorder %s514_s3, %s389_s28  ;;  %p393_p2 = scmp.lt.u32.totalorder %s389_s28, %s514_s3 }
 0x128   :  { %p395_p3 = pnand %p393_p2, %p390_p1 }
 0x12a   :  { %398 = shalt.err (!%p395_p3)
}
 0x12b   :  { %233 = dma.vmem_to_hbm [thread:$0]  %s228_s22, 1024, %s514_s3, [#allocation4], %s407_s24, %s407_s24, %s408_s25  }
 0x12c   :  { %403 = dma.done.wait [#allocation4], 1024  }
 0x12d   :  { %404 = vsyncadd [#allocation4], 4294966272 }
 0x12e   :  { %237 = vsyncpa [#allocation3], 1 }
 0x12f   :  { %238 = vsyncpa [#allocation6], 1 }
 0x130   :  { %239 = vsyncpa [#allocation4], 1 }

</bundles_post_ra>
